<compile_context>
chip_gen: v7x
topology: tpu7x:2x2x1
jax: 0.10.0
libtpu: 0.0.40
codegen_flags: <defaults>
</compile_context>

<pallas_src>
import jax
import jax.numpy as jnp
from jax.experimental import pallas as pl
from jax.experimental.pallas import tpu as pltpu

_PAD = 128                               # lane-dense width for MLP dims / logits
_TV = 512                                # vocab chunk for the streamed path
_RESIDENT_VMEM_BUDGET = 10 * 1024 * 1024 # rough bf16 double-buffered budget


def _round_up(x, m):
    return (x + m - 1) // m * m


# ----------------------------- kernel bodies --------------------------------

def _mlp_finish(pooled_sum, inv_sz,
                w3_ref, b3_ref, w4_ref, b4_ref, w5_ref, b5_ref, out_ref):
    """Mean-divide (f32, exact) + 3-layer MLP (bf16 MXU, f32 accumulate)."""
    pooled = (pooled_sum * inv_sz).astype(jnp.bfloat16)            # (BM, 128)
    h = jnp.dot(pooled, w3_ref[...],
                preferred_element_type=jnp.float32) + b3_ref[...]
    h = jnp.maximum(h, 0.0).astype(jnp.bfloat16)                   # (BM, 128) pad of 64
    h = jnp.dot(h, w4_ref[...],
                preferred_element_type=jnp.float32) + b4_ref[...]
    h = jnp.maximum(h, 0.0).astype(jnp.bfloat16)                   # (BM, 128) pad of 16
    out_ref[...] = jnp.dot(h, w5_ref[...],
                           preferred_element_type=jnp.float32) + b5_ref[...]


def _kernel_resident(cnt_ref, sz_ref, emb_ref,
                     w3_ref, b3_ref, w4_ref, b4_ref, w5_ref, b5_ref, out_ref):
    # Whole bf16 table is a constant VMEM block: single MXU matmul, no scratch.
    pooled = jnp.dot(cnt_ref[...], emb_ref[...],
                     preferred_element_type=jnp.float32)           # (BM, D) f32
    _mlp_finish(pooled, sz_ref[...],
                w3_ref, b3_ref, w4_ref, b4_ref, w5_ref, b5_ref, out_ref)


def _kernel_streamed(cnt_ref, sz_ref, emb_ref,
                     w3_ref, b3_ref, w4_ref, b4_ref, w5_ref, b5_ref,
                     out_ref, acc_ref):
    k = pl.program_id(1)                  # vocab-chunk (reduction) axis

    @pl.when(k == 0)
    def _():
        acc_ref[...] = jnp.zeros_like(acc_ref)

    # (BM, TV) exact-count chunk @ (TV, D) table chunk, f32 accumulation.
    acc_ref[...] += jnp.dot(cnt_ref[...], emb_ref[...],
                            preferred_element_type=jnp.float32)

    @pl.when(k == pl.num_programs(1) - 1)
    def _():
        _mlp_finish(acc_ref[...], sz_ref[...],
                    w3_ref, b3_ref, w4_ref, b4_ref, w5_ref, b5_ref, out_ref)


# ------------------------------- wrapper -------------------------------------

def _forward(text, offsets, params):
    """text: (T,) int32 token ids; offsets: (B,) int32 bag starts (sorted, offsets[0]==0)."""
    T = text.shape[0]
    B = offsets.shape[0]
    emb = params["embedding"]                      # (V, 128) f32
    V, D = emb.shape
    w3, b3 = params["w3"], params["b3"]            # (64,128),(64,)
    w4, b4 = params["w4"], params["b4"]            # (16,64),(16,)
    w5, b5 = params["w5"], params["b5"]            # (C,16),(C,)
    num_class = w5.shape[0]

    # ---- tiling (static) -----------------------------------------------------
    BM = min(256, _round_up(B, 16))                # bf16 sublane-aligned batch tile
    B_pad = _round_up(B, BM)

    V_pad_res = _round_up(V, 128)
    # resident iff bf16 table + count block (double-buffered) stay well under VMEM
    resident = 2 * 2 * (V_pad_res * D + BM * V_pad_res) <= _RESIDENT_VMEM_BUDGET
    V_pad = V_pad_res if resident else _round_up(V, _TV)

    # ---- glue (fused under jit) ---------------------------------------------
    # Standard EmbeddingBag contract assumed: offsets sorted, offsets[0] == 0.
    tok = jnp.arange(T, dtype=jnp.int32)
    seg_ids = jnp.searchsorted(offsets, tok, side="right").astype(jnp.int32) - 1
    ends = jnp.concatenate([offsets[1:], jnp.array([T], dtype=offsets.dtype)])
    sizes = (ends - offsets).astype(jnp.float32)                   # bag sizes
    inv = jnp.zeros((B_pad, 1), jnp.float32).at[:B, 0].set(
        1.0 / jnp.maximum(sizes, 1.0))             # empty bag -> 0 output (PyTorch)

    # Exact integer counts, scattered once directly at the padded shape.
    cnt = (jnp.zeros((B_pad, V_pad), jnp.float32)
           .at[seg_ids, text].add(1.0)
           .astype(jnp.bfloat16))
    emb_p = jnp.zeros((V_pad, D), jnp.bfloat16).at[:V, :].set(emb.astype(jnp.bfloat16))

    # MLP weights pre-transposed to (in, out), bf16, zero-padded to 128 lanes.
    w3p = jnp.zeros((D, _PAD), jnp.bfloat16).at[:, :64].set(w3.T.astype(jnp.bfloat16))
    b3p = jnp.zeros((1, _PAD), jnp.float32).at[0, :64].set(b3)
    w4p = jnp.zeros((_PAD, _PAD), jnp.bfloat16).at[:64, :16].set(w4.T.astype(jnp.bfloat16))
    b4p = jnp.zeros((1, _PAD), jnp.float32).at[0, :16].set(b4)
    w5p = jnp.zeros((_PAD, _PAD), jnp.bfloat16).at[:16, :num_class].set(
        w5.T.astype(jnp.bfloat16))
    b5p = jnp.zeros((1, _PAD), jnp.float32).at[0, :num_class].set(b5)

    args = (cnt, inv, emb_p, w3p, b3p, w4p, b4p, w5p, b5p)
    out_shape = jax.ShapeDtypeStruct((B_pad, _PAD), jnp.float32)

    if resident:
        const = lambda s: pl.BlockSpec(s, lambda i: (0, 0))
        out = pl.pallas_call(
            _kernel_resident,
            out_shape=out_shape,
            grid_spec=pltpu.PrefetchScalarGridSpec(
                num_scalar_prefetch=0,
                grid=(B_pad // BM,),
                in_specs=[
                    pl.BlockSpec((BM, V_pad), lambda i: (i, 0)),   # counts
                    pl.BlockSpec((BM, 1), lambda i: (i, 0)),       # 1/bag_size
                    const((V_pad, D)),                             # full table
                    const((D, _PAD)), const((1, _PAD)),            # fc3
                    const((_PAD, _PAD)), const((1, _PAD)),         # fc4
                    const((_PAD, _PAD)), const((1, _PAD)),         # fc5
                ],
                out_specs=pl.BlockSpec((BM, _PAD), lambda i: (i, 0)),
            ),
            compiler_params=pltpu.CompilerParams(
                dimension_semantics=("parallel",)),
        )(*args)
    else:
        const = lambda s: pl.BlockSpec(s, lambda i, k: (0, 0))
        out = pl.pallas_call(
            _kernel_streamed,
            out_shape=out_shape,
            grid_spec=pltpu.PrefetchScalarGridSpec(
                num_scalar_prefetch=0,
                grid=(B_pad // BM, V_pad // _TV),
                in_specs=[
                    pl.BlockSpec((BM, _TV), lambda i, k: (i, k)),  # count chunk
                    pl.BlockSpec((BM, 1), lambda i, k: (i, 0)),    # 1/bag_size
                    pl.BlockSpec((_TV, D), lambda i, k: (k, 0)),   # table chunk
                    const((D, _PAD)), const((1, _PAD)),            # fc3
                    const((_PAD, _PAD)), const((1, _PAD)),         # fc4
                    const((_PAD, _PAD)), const((1, _PAD)),         # fc5
                ],
                out_specs=pl.BlockSpec((BM, _PAD), lambda i, k: (i, 0)),
                scratch_shapes=[pltpu.VMEM((BM, D), jnp.float32)],
            ),
            compiler_params=pltpu.CompilerParams(
                dimension_semantics=("parallel", "arbitrary")),
        )(*args)

    return out[:B, :num_class]


text_classification_forward = jax.jit(_forward)


# ----------------------------- params / reference ---------------------------

def init_params(key, vocab_size, embed_dim, num_class):
    initrange = 0.5
    ks = jax.random.split(key, 4)
    uni = lambda k, shape: jax.random.uniform(
        k, shape, dtype=jnp.float32, minval=-initrange, maxval=initrange)
    return {
        "embedding": uni(ks[0], (vocab_size, embed_dim)),
        "w3": uni(ks[1], (64, 128)), "b3": jnp.zeros((64,), jnp.float32),
        "w4": uni(ks[2], (16, 64)),  "b4": jnp.zeros((16,), jnp.float32),
        "w5": uni(ks[3], (num_class, 16)), "b5": jnp.zeros((num_class,), jnp.float32),
    }


def _reference_forward(text, offsets, params):
    # Pure-JAX f32 reference of the PyTorch forward (EmbeddingBag mode='mean').
    T = text.shape[0]
    B = offsets.shape[0]
    seg_ids = jnp.sum(jnp.arange(T)[None, :] >= offsets[:, None], axis=0) - 1
    gathered = params["embedding"][text]                      # (T, 128)
    sums = jax.ops.segment_sum(gathered, seg_ids, num_segments=B)
    counts = jax.ops.segment_sum(jnp.ones((T,), jnp.float32), seg_ids, num_segments=B)
    pooled = sums / jnp.maximum(counts, 1.0)[:, None]
    h = jnp.maximum(pooled @ params["w3"].T + params["b3"], 0.0)
    h = jnp.maximum(h @ params["w4"].T + params["b4"], 0.0)
    return h @ params["w5"].T + params["b5"]


if __name__ == "__main__":
    key = jax.random.PRNGKey(0)
    embed_dim, num_class = 128, 4
    B, T = 8, 64  # 8 bags over 64 total tokens
    offsets = jnp.arange(B, dtype=jnp.int32) * (T // B)

    # --- Test 1: small vocab -> table-resident path --------------------------
    vocab_size = 256
    k_param, k_text, k_big = jax.random.split(key, 3)
    params = init_params(k_param, vocab_size, embed_dim, num_class)
    text = jax.random.randint(k_text, (T,), 0, vocab_size, dtype=jnp.int32)

    logits = jax.block_until_ready(text_classification_forward(text, offsets, params))
    ref = _reference_forward(text, offsets, params)
    assert logits.shape == (B, num_class)
    # bf16 table/weights on the MXU -> looser tolerance vs the f32 reference.
    assert jnp.allclose(logits, ref, atol=5e-2, rtol=5e-2), "resident path mismatch"

    # --- Test 2: larger vocab -> streamed-table path --------------------------
    vocab_size2 = 36000
    params2 = init_params(k_big, vocab_size2, embed_dim, num_class)
    text2 = jax.random.randint(jax.random.fold_in(k_big, 1), (T,), 0,
                               vocab_size2, dtype=jnp.int32)
    logits2 = jax.block_until_ready(text_classification_forward(text2, offsets, params2))
    ref2 = _reference_forward(text2, offsets, params2)
    assert logits2.shape == (B, num_class)
    assert jnp.allclose(logits2, ref2, atol=5e-2, rtol=5e-2), "streamed path mismatch"

    print("KERNEL_OK")
</pallas_src>

<mosaic_0001>
module attributes {stable_mosaic.version = 11 : i64} {
  func.func private @main(%arg0: i32) attributes {dimension_semantics = [#tpu.dimension_semantics<core_parallel>], iteration_bounds = array<i64: 2>, tpu.core_type = #tpu.core_type<sc_scalar_subcore>, window_params = []} {
    return
  }
}

module attributes {stable_mosaic.version = 11 : i64} {
  func.func private @main(%arg0: i32) attributes {dimension_semantics = [#tpu.dimension_semantics<core_parallel>], iteration_bounds = array<i64: 2>, tpu.core_type = #tpu.core_type<sc_scalar_subcore>, window_params = []} {
    return
  }
}

module attributes {stable_mosaic.version = 11 : i64} {
  func.func @_kernel_resident(%arg0: i32, %arg1: memref<16x256xbf16, #tpu.memory_space<vmem>>, %arg2: memref<16x1xf32, #tpu.memory_space<vmem>>, %arg3: memref<256x128xbf16, #tpu.memory_space<vmem>>, %arg4: memref<128x128xbf16, #tpu.memory_space<vmem>>, %arg5: memref<1x128xf32, #tpu.memory_space<vmem>>, %arg6: memref<128x128xbf16, #tpu.memory_space<vmem>>, %arg7: memref<1x128xf32, #tpu.memory_space<vmem>>, %arg8: memref<128x128xbf16, #tpu.memory_space<vmem>>, %arg9: memref<1x128xf32, #tpu.memory_space<vmem>>, %arg10: memref<16x128xf32, #tpu.memory_space<vmem>>) attributes {dimension_semantics = [#tpu.dimension_semantics<parallel>], iteration_bounds = array<i64: 1>, scalar_prefetch = 0 : i64, scratch_operands = 0 : i64, tpu.core_type = #tpu.core_type<tc>, window_params = [{transform_indices = @transform_0, window_bounds = array<i64: 16, 256>}, {transform_indices = @transform_1, window_bounds = array<i64: 16, 1>}, {pipeline_mode = #tpu.pipeline_mode<synchronous>, transform_indices = @transform_2, window_bounds = array<i64: 256, 128>}, {pipeline_mode = #tpu.pipeline_mode<synchronous>, transform_indices = @transform_3, window_bounds = array<i64: 128, 128>}, {pipeline_mode = #tpu.pipeline_mode<synchronous>, transform_indices = @transform_4, window_bounds = array<i64: 1, 128>}, {pipeline_mode = #tpu.pipeline_mode<synchronous>, transform_indices = @transform_5, window_bounds = array<i64: 128, 128>}, {pipeline_mode = #tpu.pipeline_mode<synchronous>, transform_indices = @transform_6, window_bounds = array<i64: 1, 128>}, {pipeline_mode = #tpu.pipeline_mode<synchronous>, transform_indices = @transform_7, window_bounds = array<i64: 128, 128>}, {pipeline_mode = #tpu.pipeline_mode<synchronous>, transform_indices = @transform_8, window_bounds = array<i64: 1, 128>}, {transform_indices = @transform_9, window_bounds = array<i64: 16, 128>}]} {
    %c0 = arith.constant 0 : index
    %c0_0 = arith.constant 0 : index
    %0 = vector.load %arg1[%c0, %c0_0] : memref<16x256xbf16, #tpu.memory_space<vmem>>, vector<16x256xbf16>
    %c0_1 = arith.constant 0 : index
    %c0_2 = arith.constant 0 : index
    %1 = vector.load %arg3[%c0_1, %c0_2] : memref<256x128xbf16, #tpu.memory_space<vmem>>, vector<256x128xbf16>
    %cst = arith.constant dense<0.000000e+00> : vector<16x128xf32>
    %2 = tpu.matmul %0, %1, %cst {dimension_numbers = #tpu.dot_dimension_numbers<[1], [0], [0], [1], [0, 0, 1, 1], [], []>} : vector<16x256xbf16>, vector<256x128xbf16>, vector<16x128xf32> -> vector<16x128xf32>
    %c0_3 = arith.constant 0 : index
    %c0_4 = arith.constant 0 : index
    %3 = vector.load %arg2[%c0_3, %c0_4] : memref<16x1xf32, #tpu.memory_space<vmem>>, vector<16x1xf32>
    %4 = vector.broadcast %3 : vector<16x1xf32> to vector<16x128xf32>
    %5 = arith.mulf %2, %4 : vector<16x128xf32>
    %6 = arith.truncf %5 : vector<16x128xf32> to vector<16x128xbf16>
    %c0_5 = arith.constant 0 : index
    %c0_6 = arith.constant 0 : index
    %7 = vector.load %arg4[%c0_5, %c0_6] : memref<128x128xbf16, #tpu.memory_space<vmem>>, vector<128x128xbf16>
    %cst_7 = arith.constant dense<0.000000e+00> : vector<16x128xf32>
    %8 = tpu.matmul %6, %7, %cst_7 {dimension_numbers = #tpu.dot_dimension_numbers<[1], [0], [0], [1], [0, 0, 1, 1], [], []>} : vector<16x128xbf16>, vector<128x128xbf16>, vector<16x128xf32> -> vector<16x128xf32>
    %c0_8 = arith.constant 0 : index
    %c0_9 = arith.constant 0 : index
    %9 = vector.load %arg5[%c0_8, %c0_9] : memref<1x128xf32, #tpu.memory_space<vmem>>, vector<1x128xf32>
    %10 = vector.broadcast %9 : vector<1x128xf32> to vector<16x128xf32>
    %11 = arith.addf %8, %10 : vector<16x128xf32>
    %cst_10 = arith.constant 0.000000e+00 : f32
    %12 = vector.broadcast %cst_10 : f32 to vector<16x128xf32>
    %13 = arith.maximumf %11, %12 : vector<16x128xf32>
    %14 = arith.truncf %13 : vector<16x128xf32> to vector<16x128xbf16>
    %c0_11 = arith.constant 0 : index
    %c0_12 = arith.constant 0 : index
    %15 = vector.load %arg6[%c0_11, %c0_12] : memref<128x128xbf16, #tpu.memory_space<vmem>>, vector<128x128xbf16>
    %cst_13 = arith.constant dense<0.000000e+00> : vector<16x128xf32>
    %16 = tpu.matmul %14, %15, %cst_13 {dimension_numbers = #tpu.dot_dimension_numbers<[1], [0], [0], [1], [0, 0, 1, 1], [], []>} : vector<16x128xbf16>, vector<128x128xbf16>, vector<16x128xf32> -> vector<16x128xf32>
    %c0_14 = arith.constant 0 : index
    %c0_15 = arith.constant 0 : index
    %17 = vector.load %arg7[%c0_14, %c0_15] : memref<1x128xf32, #tpu.memory_space<vmem>>, vector<1x128xf32>
    %18 = vector.broadcast %17 : vector<1x128xf32> to vector<16x128xf32>
    %19 = arith.addf %16, %18 : vector<16x128xf32>
    %cst_16 = arith.constant 0.000000e+00 : f32
    %20 = vector.broadcast %cst_16 : f32 to vector<16x128xf32>
    %21 = arith.maximumf %19, %20 : vector<16x128xf32>
    %22 = arith.truncf %21 : vector<16x128xf32> to vector<16x128xbf16>
    %c0_17 = arith.constant 0 : index
    %c0_18 = arith.constant 0 : index
    %23 = vector.load %arg8[%c0_17, %c0_18] : memref<128x128xbf16, #tpu.memory_space<vmem>>, vector<128x128xbf16>
    %cst_19 = arith.constant dense<0.000000e+00> : vector<16x128xf32>
    %24 = tpu.matmul %22, %23, %cst_19 {dimension_numbers = #tpu.dot_dimension_numbers<[1], [0], [0], [1], [0, 0, 1, 1], [], []>} : vector<16x128xbf16>, vector<128x128xbf16>, vector<16x128xf32> -> vector<16x128xf32>
    %c0_20 = arith.constant 0 : index
    %c0_21 = arith.constant 0 : index
    %25 = vector.load %arg9[%c0_20, %c0_21] : memref<1x128xf32, #tpu.memory_space<vmem>>, vector<1x128xf32>
    %26 = vector.broadcast %25 : vector<1x128xf32> to vector<16x128xf32>
    %27 = arith.addf %24, %26 : vector<16x128xf32>
    %c0_22 = arith.constant 0 : index
    %c0_23 = arith.constant 0 : index
    %28 = vector.load %arg10[%c0_22, %c0_23] : memref<16x128xf32, #tpu.memory_space<vmem>>, vector<16x128xf32>
    tpu.vector_store %arg10[%c0_22, %c0_23], %27 {strides = array<i32>} : memref<16x128xf32, #tpu.memory_space<vmem>>, vector<16x128xf32>,
    return
  }
  func.func @transform_0(%arg0: i32) -> (i32, i32) {
    %c0_i32 = arith.constant 0 : i32
    %c0_i32_0 = arith.constant 0 : i32
    return %arg0, %c0_i32 : i32, i32
  }
  func.func @transform_1(%arg0: i32) -> (i32, i32) {
    %c0_i32 = arith.constant 0 : i32
    %c0_i32_0 = arith.constant 0 : i32
    return %arg0, %c0_i32 : i32, i32
  }
  func.func @transform_2(%arg0: i32) -> (i32, i32) {
    %c0_i32 = arith.constant 0 : i32
    %c0_i32_0 = arith.constant 0 : i32
    %c0_i32_1 = arith.constant 0 : i32
    return %c0_i32, %c0_i32_0 : i32, i32
  }
  func.func @transform_3(%arg0: i32) -> (i32, i32) {
    %c0_i32 = arith.constant 0 : i32
    %c0_i32_0 = arith.constant 0 : i32
    %c0_i32_1 = arith.constant 0 : i32
    return %c0_i32, %c0_i32_0 : i32, i32
  }
  func.func @transform_4(%arg0: i32) -> (i32, i32) {
    %c0_i32 = arith.constant 0 : i32
    %c0_i32_0 = arith.constant 0 : i32
    %c0_i32_1 = arith.constant 0 : i32
    return %c0_i32, %c0_i32_0 : i32, i32
  }
  func.func @transform_5(%arg0: i32) -> (i32, i32) {
    %c0_i32 = arith.constant 0 : i32
    %c0_i32_0 = arith.constant 0 : i32
    %c0_i32_1 = arith.constant 0 : i32
    return %c0_i32, %c0_i32_0 : i32, i32
  }
  func.func @transform_6(%arg0: i32) -> (i32, i32) {
    %c0_i32 = arith.constant 0 : i32
    %c0_i32_0 = arith.constant 0 : i32
    %c0_i32_1 = arith.constant 0 : i32
    return %c0_i32, %c0_i32_0 : i32, i32
  }
  func.func @transform_7(%arg0: i32) -> (i32, i32) {
    %c0_i32 = arith.constant 0 : i32
    %c0_i32_0 = arith.constant 0 : i32
    %c0_i32_1 = arith.constant 0 : i32
    return %c0_i32, %c0_i32_0 : i32, i32
  }
  func.func @transform_8(%arg0: i32) -> (i32, i32) {
    %c0_i32 = arith.constant 0 : i32
    %c0_i32_0 = arith.constant 0 : i32
    %c0_i32_1 = arith.constant 0 : i32
    return %c0_i32, %c0_i32_0 : i32, i32
  }
  func.func @transform_9(%arg0: i32) -> (i32, i32) {
    %c0_i32 = arith.constant 0 : i32
    %c0_i32_0 = arith.constant 0 : i32
    return %arg0, %c0_i32 : i32, i32
  }
}

</mosaic_0001>

<bundles_post_ra>
// kernel: custom-call.3
= control target key start
LH: loop header
LB: loop body
LE: loop exit
PB: predicated region body
PF: predicated region fallthrough
CT: control target
= control target key end

     0   :  { %s6_s0 = inlined_call_operand.vmem [shape: u32[64], index: 0, kind: output, shape index: {}]  }

// kernel: _forward.1
= control target key start
LH: loop header
LB: loop body
LE: loop exit
PB: predicated region body
PF: predicated region fallthrough
CT: control target
= control target key end

     0   :  { %v778_v1 = vmov 0   ;;  %v779_v2 = vmov 0.0   ;;  %vm780_vm0 = vmmov 0   ;;  %s1008_s2 = inlined_call_operand.vmem [shape: bf16[256,128], index: 2, kind: input, shape index: {}]   ;;  %s1009_s0 = inlined_call_operand.vmem [shape: bf16[16,256], index: 0, kind: input, shape index: {}]   ;;  %s1010_s1 = inlined_call_operand.vmem [shape: f32[16,1], index: 1, kind: input, shape index: {}]   ;;  %s1011_s3 = inlined_call_operand.vmem [shape: bf16[128,128], index: 3, kind: input, shape index: {}]   ;;  %s1012_s5 = inlined_call_operand.vmem [shape: bf16[128,128], index: 5, kind: input, shape index: {}]   ;;  %s1013_s7 = inlined_call_operand.vmem [shape: bf16[128,128], index: 7, kind: input, shape index: {}]   ;;  %s1014_s4 = inlined_call_operand.vmem [shape: f32[1,128], index: 4, kind: input, shape index: {}]   ;;  %s1015_s6 = inlined_call_operand.vmem [shape: f32[1,128], index: 6, kind: input, shape index: {}]   ;;  %s1016_s8 = inlined_call_operand.vmem [shape: f32[1,128], index: 8, kind: input, shape index: {}]   ;;  %s1017_s9 = inlined_call_operand.vmem [shape: f32[16,128], index: 9, kind: output, shape index: {}]  }
   0x1   :  { %v735_v0 = vld [vmem:[%s1008_s2 + $0x40] sm:$0xff]   ;;  %734 = vset.pattern.permute.xlu0 %v778_v1  ;;  %671 = vmatprep.subr.bf16.mxu1 %v779_v2  ;;  %v737_v4 = vld [vmem:[%s1008_s2 + $0x48] sm:$0xff]   ;;  %v739_v6 = vld [vmem:[%s1008_s2 + $0x50] sm:$0xff]  }
   0x2   :  { %v736_v3 = vld [vmem:[%s1008_s2] sm:$0xff]   ;;  %622 = vmatprep.subr.bf16.mxu0 %v735_v0  ;;  %v738_v5 = vld [vmem:[%s1008_s2 + $0x8] sm:$0xff]   ;;  %v740_v7 = vld [vmem:[%s1008_s2 + $0x10] sm:$0xff]   ;;  %687 = vmatprep.mubr.msk.bf16.mxu1 %vm780_vm0, %v779_v2 }
   0x3   :  { %623 = vmatpush3.bf16.msra.mxu0 %v736_v3  ;;  %v741_v8 = vld [vmem:[%s1008_s2 + $0x58] sm:$0xff]   ;;  %v743_v10 = vld [vmem:[%s1008_s2 + $0x60] sm:$0xff]   ;;  %v745_v12 = vld [vmem:[%s1008_s2 + $0x68] sm:$0xff]  }
   0x4   :  { %624 = vmatprep.subr.bf16.mxu0 %v737_v4  ;;  %v742_v9 = vld [vmem:[%s1008_s2 + $0x18] sm:$0xff]   ;;  %v744_v11 = vld [vmem:[%s1008_s2 + $0x20] sm:$0xff]   ;;  %v746_v13 = vld [vmem:[%s1008_s2 + $0x28] sm:$0xff]  }
   0x5   :  { %v753_v14 = vld [vmem:[%s1009_s0 + $0x4] ss:$8 sps:$4 sm:$0xff]   ;;  %v747_v16 = vld [vmem:[%s1008_s2 + $0x70] sm:$0xff]   ;;  %v749_v21 = vld [vmem:[%s1008_s2 + $0x78] sm:$0xff]  }
   0x6   :  { %v214_v15 = vld [vmem:[%s1010_s1] sm:$0xff]  ;;  %205 = vmatprep.mubr.bf16.mxu0 %v753_v14  ;;  %v215_v18 = vld [vmem:[%s1010_s1 + $0x8] sm:$0xff]  ;;  %v748_v20 = vld [vmem:[%s1008_s2 + $0x30] sm:$0xff]  }
   0x7   :  { %625 = vmatpush3.bf16.msra.mxu0 %v738_v5  ;;  %218 = vperm.xlu0 %734, %v214_v15   ;;  %v754_v17 = vld [vmem:[%s1011_s3] sm:$0xff]   ;;  %v755_v19 = vld [vmem:[%s1011_s3 + $0x8] sm:$0xff]   ;;  %v756_v22 = vld [vmem:[%s1011_s3 + $0x10] sm:$0xff]  }
   0x8   :  { %626 = vmatprep.subr.bf16.mxu0 %v739_v6  ;;  %672 = vmatpush3.bf16.msra.mxu1 %v754_v17  ;;  %v750_v23 = vld [vmem:[%s1008_s2 + $0x38] sm:$0xff]   ;;  %v751_v25 = vld [vmem:[%s1009_s0] ss:$8 sps:$4 sm:$0xff]   ;;  %v760_v28 = vld [vmem:[%s1011_s3 + $0x30] sm:$0xff]  }
   0x9   :  { %673 = vmatprep.subr.bf16.mxu1 %v779_v2  ;;  %v757_v24 = vld [vmem:[%s1011_s3 + $0x18] sm:$0xff]   ;;  %v758_v26 = vld [vmem:[%s1011_s3 + $0x20] sm:$0xff]   ;;  %v759_v27 = vld [vmem:[%s1011_s3 + $0x28] sm:$0xff]  }
   0xa   :  { %v761_v29 = vld [vmem:[%s1011_s3 + $0x38] sm:$0xff]   ;;  %v762_v30 = vld [vmem:[%s1012_s5] sm:$0xff]   ;;  %v763_v31 = vld [vmem:[%s1012_s5 + $0x8] sm:$0xff]  }
   0xb   :  { %627 = vmatpush3.bf16.msra.mxu0 %v740_v7  ;;  %223 = vperm.xlu0 %734, %v215_v18   ;;  %v764_v32 = vld [vmem:[%s1012_s5 + $0x10] sm:$0xff]   ;;  %v765_v33 = vld [vmem:[%s1012_s5 + $0x18] sm:$0xff]   ;;  %v766_v34 = vld [vmem:[%s1012_s5 + $0x20] sm:$0xff]  }
   0xc   :  { %628 = vmatprep.subr.bf16.mxu0 %v741_v8  ;;  %674 = vmatpush3.bf16.msra.mxu1 %v755_v19  ;;  %v767_v35 = vld [vmem:[%s1012_s5 + $0x28] sm:$0xff]   ;;  %v768_v47 = vld [vmem:[%s1012_s5 + $0x30] sm:$0xff]   ;;  %v769_v48 = vld [vmem:[%s1012_s5 + $0x38] sm:$0xff]  }
   0xd   :  { %675 = vmatprep.subr.bf16.mxu1 %v779_v2  ;;  %v770_v49 = vld [vmem:[%s1013_s7] sm:$0xff]   ;;  %v771_v50 = vld [vmem:[%s1013_s7 + $0x8] sm:$0xff]   ;;  %v772_v51 = vld [vmem:[%s1013_s7 + $0x10] sm:$0xff]  }
   0xe   :  { %v773_v52 = vld [vmem:[%s1013_s7 + $0x18] sm:$0xff]   ;;  %v774_v53 = vld [vmem:[%s1013_s7 + $0x20] sm:$0xff]   ;;  %v775_v54 = vld [vmem:[%s1013_s7 + $0x28] sm:$0xff]  }
   0xf   :  { %629 = vmatpush3.bf16.msra.mxu0 %v742_v9  ;;  %v595_v55 = vld [vmem:[%s1014_s4] ss:$0 sm:$0xff]  ;;  %v776_v1 = vld [vmem:[%s1013_s7 + $0x30] sm:$0xff]   ;;  %v777_v3 = vld [vmem:[%s1013_s7 + $0x38] sm:$0xff]  }
  0x10   :  { %630 = vmatprep.subr.bf16.mxu0 %v743_v10  ;;  %676 = vmatpush3.bf16.msra.mxu1 %v756_v22  ;;  %v604_v4 = vld [vmem:[%s1015_s6] ss:$0 sm:$0xff] }
  0x11   :  { %677 = vmatprep.subr.bf16.mxu1 %v779_v2 }
  0x13   :  { %631 = vmatpush3.bf16.msra.mxu0 %v744_v11 }
  0x14   :  { %632 = vmatprep.subr.bf16.mxu0 %v745_v12  ;;  %678 = vmatpush3.bf16.msra.mxu1 %v757_v24 }
  0x15   :  { %679 = vmatprep.subr.bf16.mxu1 %v779_v2 }
  0x17   :  { %633 = vmatpush3.bf16.msra.mxu0 %v746_v13 }
  0x18   :  { %634 = vmatprep.subr.bf16.mxu0 %v747_v16  ;;  %680 = vmatpush3.bf16.msra.mxu1 %v758_v26 }
  0x19   :  { %681 = vmatprep.subr.bf16.mxu1 %v779_v2 }
  0x1b   :  { %635 = vmatpush3.bf16.msra.mxu0 %v748_v20 }
  0x1c   :  { %636 = vmatprep.subr.bf16.mxu0 %v749_v21  ;;  %682 = vmatpush3.bf16.msra.mxu1 %v759_v27 }
  0x1d   :  { %683 = vmatprep.subr.bf16.mxu1 %v779_v2 }
  0x1f   :  { %637 = vmatpush3.bf16.msra.mxu0 %v750_v23 }
  0x20   :  { %691 = vmatprep.subr.bf16.mxu0 %v779_v2  ;;  %684 = vmatpush3.bf16.msra.mxu1 %v760_v28 }
  0x21   :  { %685 = vmatprep.subr.bf16.mxu1 %v779_v2 }
  0x22   :  { %206 = vmatmul.mubr.bf16.vlgmr.msra.gmra.mrb[0].mxu0 %v751_v25 }
  0x23   :  { %707 = vmatprep.mubr.msk.bf16.mxu0 %vm780_vm0, %v779_v2  ;;  %692 = vmatpush3.bf16.msra.mxu0 %v762_v30 }
  0x24   :  { %686 = vmatpush3.bf16.msra.mxu1 %v761_v29  ;;  %693 = vmatprep.subr.bf16.mxu0 %v779_v2 }
  0x25   :  { %711 = vmatprep.subr.bf16.mxu1 %v779_v2 }
  0x27   :  { %694 = vmatpush3.bf16.msra.mxu0 %v763_v31 }
  0x28   :  { %695 = vmatprep.subr.bf16.mxu0 %v779_v2 }
  0x2b   :  { %696 = vmatpush3.bf16.msra.mxu0 %v764_v32 }
  0x2c   :  { %697 = vmatprep.subr.bf16.mxu0 %v779_v2 }
  0x2f   :  { %698 = vmatpush3.bf16.msra.mxu0 %v765_v33 }
  0x30   :  { %699 = vmatprep.subr.bf16.mxu0 %v779_v2 }
  0x33   :  { %700 = vmatpush3.bf16.msra.mxu0 %v766_v34 }
  0x34   :  { %701 = vmatprep.subr.bf16.mxu0 %v779_v2 }
  0x37   :  { %702 = vmatpush3.bf16.msra.mxu0 %v767_v35 }
  0x38   :  { %703 = vmatprep.subr.bf16.mxu0 %v779_v2 }
  0x3b   :  { %704 = vmatpush3.bf16.msra.mxu0 %v768_v47 }
  0x3c   :  { %705 = vmatprep.subr.bf16.mxu0 %v779_v2 }
  0x3f   :  { %706 = vmatpush3.bf16.msra.mxu0 %v769_v48 }
  0x86   :  { %v219_v36 = vpop.permute.xlu0 %218 }
  0x8a   :  { %v224_v43 = vpop.permute.xlu0 %223 }
  0xf5   :  { %v638_v37 = vpop.f32.mrb[0].mxu0 }
  0xf6   :  { %v639_v38 = vpop.f32.mrb[1].mxu0 }
  0xf7   :  { %v640_v39 = vadd.f32 %v639_v38, %v638_v37  ;;  %v641_v40 = vpop.f32.mrb[2].mxu0 }
  0xf8   :  { %v642_v41 = vpop.f32.mrb[3].mxu0 }
  0xf9   :  { %v643_v42 = vadd.f32 %v642_v41, %v641_v40  ;;  %v226_v44 = vmul.f32 %v640_v39, %v219_v36 }
  0xfb   :  { %v227_v45 = vmul.f32 %v643_v42, %v224_v43 }
  0xfd   :  { %v228_v46 = vpack.c.bf16 %v227_v45, %v226_v44 }
  0xff   :  { %688 = vmatmul.mubr.bf16.vlgmr.msra.gmra.mrb[0].mxu1 %v228_v46 }
 0x100   :  { %727 = vmatprep.mubr.msk.bf16.mxu1 %vm780_vm0, %v779_v2  ;;  %712 = vmatpush3.bf16.msra.mxu1 %v770_v49 }
 0x101   :  { %713 = vmatprep.subr.bf16.mxu1 %v779_v2 }
 0x104   :  { %714 = vmatpush3.bf16.msra.mxu1 %v771_v50 }
 0x105   :  { %715 = vmatprep.subr.bf16.mxu1 %v779_v2 }
 0x108   :  { %716 = vmatpush3.bf16.msra.mxu1 %v772_v51 }
 0x109   :  { %717 = vmatprep.subr.bf16.mxu1 %v779_v2 }
 0x10c   :  { %718 = vmatpush3.bf16.msra.mxu1 %v773_v52 }
 0x10d   :  { %719 = vmatprep.subr.bf16.mxu1 %v779_v2 }
 0x110   :  { %720 = vmatpush3.bf16.msra.mxu1 %v774_v53 }
 0x111   :  { %721 = vmatprep.subr.bf16.mxu1 %v779_v2 }
 0x114   :  { %722 = vmatpush3.bf16.msra.mxu1 %v775_v54 }
 0x115   :  { %723 = vmatprep.subr.bf16.mxu1 %v779_v2 }
 0x118   :  { %724 = vmatpush3.bf16.msra.mxu1 %v776_v1 }
 0x119   :  { %725 = vmatprep.subr.bf16.mxu1 %v779_v2  ;;  %v613_v2 = vld [vmem:[%s1016_s8] ss:$0 sm:$0xff] }
 0x11c   :  { %726 = vmatpush3.bf16.msra.mxu1 %v777_v3 }
 0x1d2   :  { %v334_v56 = vpop.f32.mrb[0].mxu1 }
 0x1d3   :  { %v335_v57 = vadd.f32 %v595_v55, %v334_v56  ;;  %v689_v58 = vpop.f32.mrb[1].mxu1 }
 0x1d4   :  { %v337_v59 = vpop.f32.mrb[2].mxu1 }
 0x1d5   :  { %v338_v60 = vadd.f32 %v595_v55, %v337_v59  ;;  %v690_v61 = vpop.f32.mrb[3].mxu1  ;;  %v341_v62 = vmax.f32 %v335_v57, 0.0 }
 0x1d7   :  { %v342_v63 = vmax.f32 %v338_v60, 0.0 }
 0x1d9   :  { %v343_v0 = vpack.c.bf16 %v342_v63, %v341_v62 }
 0x1db   :  { %708 = vmatmul.mubr.bf16.vlgmr.msra.gmra.mrb[4].mxu0 %v343_v0 }
 0x2ae   :  { %v449_v5 = vpop.f32.mrb[4].mxu0 }
 0x2af   :  { %v450_v6 = vadd.f32 %v604_v4, %v449_v5  ;;  %v709_v7 = vpop.f32.mrb[5].mxu0 }
 0x2b0   :  { %v452_v8 = vpop.f32.mrb[6].mxu0 }
 0x2b1   :  { %v453_v9 = vadd.f32 %v604_v4, %v452_v8  ;;  %v710_v10 = vpop.f32.mrb[7].mxu0  ;;  %v456_v11 = vmax.f32 %v450_v6, 0.0 }
 0x2b3   :  { %v457_v12 = vmax.f32 %v453_v9, 0.0 }
 0x2b5   :  { %v458_v13 = vpack.c.bf16 %v457_v12, %v456_v11 }
 0x2b7   :  { %728 = vmatmul.mubr.bf16.vlgmr.msra.gmra.mrb[4].mxu1 %v458_v13 }
 0x38a   :  { %v564_v14 = vpop.f32.mrb[4].mxu1 }
 0x38b   :  { %v565_v15 = vadd.f32 %v613_v2, %v564_v14  ;;  %v729_v16 = vpop.f32.mrb[5].mxu1 }
 0x38c   :  { %v567_v17 = vpop.f32.mrb[6].mxu1 }
 0x38d   :  { %571 = vst [vmem:[%s1017_s9] sm:$0xff] %v565_v15  ;;  %v568_v18 = vadd.f32 %v613_v2, %v567_v17  ;;  %v730_v19 = vpop.f32.mrb[7].mxu1 }
 0x38f   :  { %572 = vst [vmem:[%s1017_s9 + $0x8] sm:$0xff] %v568_v18 }

</bundles_post_ra>
